<compile_context>
chip_gen: v5e
topology: v5e:2x2
jax: 0.10.0
libtpu: 0.0.40
codegen_flags: <defaults>
</compile_context>

<pallas_src>
import math

import jax
import jax.numpy as jnp
from jax.experimental import pallas as pl
from jax.experimental.pallas import tpu as pltpu

_SUBLANE = 8


def _round_up(x, m):
    return ((x + m - 1) // m) * m


def _cdiv(a, b):
    return (a + b - 1) // b


def _vmem_budget_bytes():
    """Generation-aware VMEM budget (half of physical: 32 MiB v7x, 64 MiB v5e/v6e)."""
    try:
        return int(pltpu.get_tpu_info().vmem_capacity_bytes) // 2
    except Exception:
        return 32 * 1024 * 1024  # conservative fallback (v7x-scoped default)


def _make_kernel(cast_lhs_to_f32):
    def kernel(x_ref, w1_ref, b1_ref, w2_ref, b2_ref, o_ref):
        # x:  (tm, D_in)   w1: (D_in, H)   b1: (1, H)
        # w2: (H, C)       b2: (1, C)      o:  (tm, C)
        x = x_ref[...]
        if cast_lhs_to_f32 and x.dtype != jnp.float32:
            # Matches torch's x.float(). For bf16 inputs on v6e/v7x one may skip this
            # (native bf16 MXU LHS) at the cost of slight deviation from torch.
            x = x.astype(jnp.float32)
        h = jnp.tanh(
            jnp.dot(x, w1_ref[...], preferred_element_type=jnp.float32) + b1_ref[...]
        )
        o_ref[...] = (
            jnp.dot(h, w2_ref[...], preferred_element_type=jnp.float32) + b2_ref[...]
        ).astype(o_ref.dtype)

    return kernel


def prediction_classification(
    features, w1, b1, w2, b2, *, target_tile_bytes=4 * 1024 * 1024, cast_input_to_f32=True
):
    """features: (B, D_in); w1: (D_in, H); b1: (1, H); w2: (H, C); b2: (1, C).

    Returns (B, C) float32 = tanh(features.float() @ w1 + b1) @ w2 + b2
    (dropout is identity in eval mode).
    """
    B, D_in = features.shape
    H = w1.shape[1]
    C = w2.shape[1]

    x_itemsize = jnp.dtype(features.dtype).itemsize
    w_itemsize = jnp.dtype(w1.dtype).itemsize
    budget = _vmem_budget_bytes()

    # --- Row tile: sized by bytes (~2-8 MiB of activations per tile). ---
    tm_cap = max(_SUBLANE, (target_tile_bytes // max(1, D_in * x_itemsize)))
    tm_cap = (tm_cap // _SUBLANE) * _SUBLANE
    if B > 2 * _SUBLANE:
        # Keep >= 2 grid steps so v7x's 2 TensorCores both get work.
        tm_cap = min(tm_cap, _round_up(_cdiv(B, 2), _SUBLANE))

    if tm_cap >= B:
        tm = B  # single full-extent block (any B, including non-multiples of 8)
    else:
        tm = tm_cap  # multiple of 8; ragged last block handled by Pallas

    # --- VMEM guard: double-buffered x/out tiles + resident (double-buffered) weights. ---
    def _fits(tm_):
        x_bytes = 2 * tm_ * D_in * x_itemsize
        out_bytes = 2 * tm_ * C * 4
        w_bytes = 2 * (D_in * H + H + H * C + C) * w_itemsize
        return x_bytes + out_bytes + w_bytes <= int(0.75 * budget)

    while tm > _SUBLANE and not _fits(tm):
        tm = max(_SUBLANE, ((tm // 2) // _SUBLANE) * _SUBLANE)

    grid = (_cdiv(B, tm),)

    cost = pl.CostEstimate(
        flops=2 * B * (D_in * H + H * C),
        transcendentals=B * H,
        bytes_accessed=(
            B * D_in * x_itemsize
            + (D_in * H + H) * w_itemsize
            + (H * C + C) * jnp.dtype(w2.dtype).itemsize
            + B * C * 4
        ),
    )

    out = pl.pallas_call(
        _make_kernel(cast_input_to_f32),
        out_shape=jax.ShapeDtypeStruct((B, C), jnp.float32),
        grid=grid,
        in_specs=[
            # Batch-tiled activations (pipelined / double-buffered across the grid).
            pl.BlockSpec((tm, D_in), lambda i: (i, 0)),
            # Weights & biases: full-extent, same block every step -> VMEM-resident.
            pl.BlockSpec((D_in, H), lambda i: (0, 0)),
            pl.BlockSpec((1, H), lambda i: (0, 0)),
            pl.BlockSpec((H, C), lambda i: (0, 0)),
            pl.BlockSpec((1, C), lambda i: (0, 0)),
        ],
        out_specs=pl.BlockSpec((tm, C), lambda i: (i, 0)),
        compiler_params=pltpu.CompilerParams(
            # Independent row tiles -> shard across v7x's 2 TensorCores.
            dimension_semantics=("parallel",),
            vmem_limit_bytes=budget,
        ),
        cost_estimate=cost,
    )(features, w1, b1, w2, b2)

    return out


def init_params(key, input_size, hidden_size, num_classes):
    """Deterministic PyTorch-style nn.Linear init: U(-1/sqrt(fan_in), 1/sqrt(fan_in))."""
    k1, k2, k3, k4 = jax.random.split(key, 4)
    bound1 = 1.0 / math.sqrt(input_size)
    bound2 = 1.0 / math.sqrt(hidden_size)
    w1 = jax.random.uniform(k1, (input_size, hidden_size), jnp.float32, -bound1, bound1)
    b1 = jax.random.uniform(k2, (1, hidden_size), jnp.float32, -bound1, bound1)
    w2 = jax.random.uniform(k3, (hidden_size, num_classes), jnp.float32, -bound2, bound2)
    b2 = jax.random.uniform(k4, (1, num_classes), jnp.float32, -bound2, bound2)
    return w1, b1, w2, b2


if __name__ == "__main__":
    key = jax.random.PRNGKey(0)
    k_feat, k_par = jax.random.split(key)

    batch = 8
    input_size = 32   # stand-in for args.hidden_size when input_size is None
    hidden_size = 32
    num_classes = 2

    features = jax.random.normal(k_feat, (batch, input_size), jnp.float32)
    w1, b1, w2, b2 = init_params(k_par, input_size, hidden_size, num_classes)

    out = prediction_classification(features, w1, b1, w2, b2)
    jax.block_until_ready(out)

    # Pure-JAX reference (dropout is identity in eval mode).
    ref = jnp.tanh(features @ w1 + b1) @ w2 + b2
    assert out.shape == (batch, num_classes), out.shape
    assert jnp.allclose(out, ref, atol=1e-5, rtol=1e-5)

    # Larger, non-tile-multiple batch: exercises the multi-step grid + ragged last block.
    big_B = 1000
    feats_big = jax.random.normal(jax.random.PRNGKey(1), (big_B, input_size), jnp.float32)
    out_big = prediction_classification(feats_big, w1, b1, w2, b2)
    jax.block_until_ready(out_big)
    ref_big = jnp.tanh(feats_big @ w1 + b1) @ w2 + b2
    assert out_big.shape == (big_B, num_classes)
    assert jnp.allclose(out_big, ref_big, atol=1e-5, rtol=1e-5)

    print("KERNEL_OK")
</pallas_src>

<mosaic_0001>
module attributes {stable_mosaic.version = 11 : i64} {
  func.func @kernel(%arg0: i32, %arg1: memref<8x32xf32, #tpu.memory_space<vmem>>, %arg2: memref<32x32xf32, #tpu.memory_space<vmem>>, %arg3: memref<1x32xf32, #tpu.memory_space<vmem>>, %arg4: memref<32x2xf32, #tpu.memory_space<vmem>>, %arg5: memref<1x2xf32, #tpu.memory_space<vmem>>, %arg6: memref<8x2xf32, #tpu.memory_space<vmem>>) attributes {dimension_semantics = [#tpu.dimension_semantics<parallel>], iteration_bounds = array<i64: 1>, scalar_prefetch = 0 : i64, scratch_operands = 0 : i64, tpu.core_type = #tpu.core_type<tc>, window_params = [{transform_indices = @transform_0, window_bounds = array<i64: 8, 32>}, {pipeline_mode = #tpu.pipeline_mode<synchronous>, transform_indices = @transform_1, window_bounds = array<i64: 32, 32>}, {pipeline_mode = #tpu.pipeline_mode<synchronous>, transform_indices = @transform_2, window_bounds = array<i64: 1, 32>}, {pipeline_mode = #tpu.pipeline_mode<synchronous>, transform_indices = @transform_3, window_bounds = array<i64: 32, 2>}, {pipeline_mode = #tpu.pipeline_mode<synchronous>, transform_indices = @transform_4, window_bounds = array<i64: 1, 2>}, {transform_indices = @transform_5, window_bounds = array<i64: 8, 2>}]} {
    %c0 = arith.constant 0 : index
    %c0_0 = arith.constant 0 : index
    %0 = vector.load %arg1[%c0, %c0_0] : memref<8x32xf32, #tpu.memory_space<vmem>>, vector<8x32xf32>
    %c0_1 = arith.constant 0 : index
    %c0_2 = arith.constant 0 : index
    %1 = vector.load %arg2[%c0_1, %c0_2] : memref<32x32xf32, #tpu.memory_space<vmem>>, vector<32x32xf32>
    %cst = arith.constant dense<0.000000e+00> : vector<8x32xf32>
    %2 = tpu.matmul %0, %1, %cst {dimension_numbers = #tpu.dot_dimension_numbers<[1], [0], [0], [1], [0, 0, 1, 1], [], []>} : vector<8x32xf32>, vector<32x32xf32>, vector<8x32xf32> -> vector<8x32xf32>
    %c0_3 = arith.constant 0 : index
    %c0_4 = arith.constant 0 : index
    %3 = vector.load %arg3[%c0_3, %c0_4] : memref<1x32xf32, #tpu.memory_space<vmem>>, vector<1x32xf32>
    %4 = vector.broadcast %3 : vector<1x32xf32> to vector<8x32xf32>
    %5 = arith.addf %2, %4 : vector<8x32xf32>
    %6 = math.tanh %5 : vector<8x32xf32>
    %c0_5 = arith.constant 0 : index
    %c0_6 = arith.constant 0 : index
    %7 = vector.load %arg4[%c0_5, %c0_6] : memref<32x2xf32, #tpu.memory_space<vmem>>, vector<32x2xf32>
    %cst_7 = arith.constant dense<0.000000e+00> : vector<8x2xf32>
    %8 = tpu.matmul %6, %7, %cst_7 {dimension_numbers = #tpu.dot_dimension_numbers<[1], [0], [0], [1], [0, 0, 1, 1], [], []>} : vector<8x32xf32>, vector<32x2xf32>, vector<8x2xf32> -> vector<8x2xf32>
    %c0_8 = arith.constant 0 : index
    %c0_9 = arith.constant 0 : index
    %9 = vector.load %arg5[%c0_8, %c0_9] : memref<1x2xf32, #tpu.memory_space<vmem>>, vector<1x2xf32>
    %10 = vector.broadcast %9 : vector<1x2xf32> to vector<8x2xf32>
    %11 = arith.addf %8, %10 : vector<8x2xf32>
    %c0_10 = arith.constant 0 : index
    %c0_11 = arith.constant 0 : index
    %12 = vector.load %arg6[%c0_10, %c0_11] : memref<8x2xf32, #tpu.memory_space<vmem>>, vector<8x2xf32>
    tpu.vector_store %arg6[%c0_10, %c0_11], %11 {strides = array<i32>} : memref<8x2xf32, #tpu.memory_space<vmem>>, vector<8x2xf32>,
    return
  }
  func.func @transform_0(%arg0: i32) -> (i32, i32) {
    %c0_i32 = arith.constant 0 : i32
    %c0_i32_0 = arith.constant 0 : i32
    return %arg0, %c0_i32 : i32, i32
  }
  func.func @transform_1(%arg0: i32) -> (i32, i32) {
    %c0_i32 = arith.constant 0 : i32
    %c0_i32_0 = arith.constant 0 : i32
    %c0_i32_1 = arith.constant 0 : i32
    return %c0_i32, %c0_i32_0 : i32, i32
  }
  func.func @transform_2(%arg0: i32) -> (i32, i32) {
    %c0_i32 = arith.constant 0 : i32
    %c0_i32_0 = arith.constant 0 : i32
    %c0_i32_1 = arith.constant 0 : i32
    return %c0_i32, %c0_i32_0 : i32, i32
  }
  func.func @transform_3(%arg0: i32) -> (i32, i32) {
    %c0_i32 = arith.constant 0 : i32
    %c0_i32_0 = arith.constant 0 : i32
    %c0_i32_1 = arith.constant 0 : i32
    return %c0_i32, %c0_i32_0 : i32, i32
  }
  func.func @transform_4(%arg0: i32) -> (i32, i32) {
    %c0_i32 = arith.constant 0 : i32
    %c0_i32_0 = arith.constant 0 : i32
    %c0_i32_1 = arith.constant 0 : i32
    return %c0_i32, %c0_i32_0 : i32, i32
  }
  func.func @transform_5(%arg0: i32) -> (i32, i32) {
    %c0_i32 = arith.constant 0 : i32
    %c0_i32_0 = arith.constant 0 : i32
    return %arg0, %c0_i32 : i32, i32
  }
}

</mosaic_0001>

<bundles_post_ra>
// kernel: tpu_custom_call.1
= control target key start
LH: loop header
LB: loop body
LE: loop exit
PB: predicated region body
PF: predicated region fallthrough
CT: control target
= control target key end

     0   :  { %10 = vsyncpa [#allocation3], 0  ;;  %s139_s21 = smov [#allocation2]   ;;  %s208_s0 = inlined_call_operand.hbm [shape: f32[8,32], index: 0, kind: input, shape index: {}]   ;;  %s209_s1 = inlined_call_operand.vmem [shape: f32[32,32], index: 1, kind: input, shape index: {}]   ;;  %s210_s2 = inlined_call_operand.vmem [shape: f32[1,32], index: 2, kind: input, shape index: {}]   ;;  %s211_s3 = inlined_call_operand.vmem [shape: f32[32,2], index: 3, kind: input, shape index: {}]   ;;  %s212_s4 = inlined_call_operand.vmem [shape: f32[1,2], index: 4, kind: input, shape index: {}]   ;;  %s213_s5 = inlined_call_operand.vmem [shape: f32[8,2], index: 5, kind: output, shape index: {}]  }
   0x1   :  { %s16_s20 = sshll.u32 %s208_s0, 4  ;;  %s18_s22 = sshll.u32 %s139_s21, 4  ;;  %s17_s20 = int_to_ptr.hbm [resolvable:$true] %s16_s20  ;;  %s19_s22 = int_to_ptr.vmem [resolvable:$true] %s18_s22 }
   0x2   :  { %21 = dma.hbm_to_vmem [thread:$0]  %s17_s20, 128, %s19_s22, [#allocation3]  }
   0x3   :  { %137 = dma.done.wait [#allocation3], 128  }
   0x4   :  { %138 = vsyncadd [#allocation3], 4294967168  ;;  %v38_v0 = vld [vmem:[%s209_s1 + $0x18] sm:$0xff]  ;;  %v37_v1 = vld [vmem:[%s209_s1 + $0x10] sm:$0xff]  ;;  %vm43_vm0 = vcmask 261120   ;;  %vm99_vm1 = vcmask 15360  }
   0x5   :  { %59 = vmatpush.msra.mxu0 %v38_v0  ;;  %v36_v2 = vld [vmem:[%s209_s1 + $0x8] sm:$0xff]  ;;  %v35_v3 = vld [vmem:[%s209_s1] sm:$0xff]  ;;  %v71_v5 = vld [vmem:[%s211_s3 + $0x18] sm:$0xff] }
   0x6   :  { %v34_v4 = vld [vmem:[#allocation2] sm:$0xff]  ;;  %91 = vmatpush.msra.mxu1 %v71_v5  ;;  %v70_v6 = vld [vmem:[%s211_s3 + $0x10] sm:$0xff]  ;;  %v69_v7 = vld [vmem:[%s211_s3 + $0x8] sm:$0xff] }
   0x7   :  { %60 = vmatpush.msra.mxu0 %v37_v1  ;;  %v68_v8 = vld [vmem:[%s211_s3] sm:$0xff] }
   0x8   :  { %92 = vmatpush.msra.mxu1 %v70_v6  ;;  %v109_v9 = vld [vmem:[%s210_s2] ss:$0 sm:$0xff] }
   0x9   :  { %61 = vmatpush.msra.mxu0 %v36_v2  ;;  %v110_v13 = vld [vmem:[%s212_s4] ss:$0 sm:$0xff] }
   0xa   :  { %93 = vmatpush.msra.mxu1 %v69_v7 }
   0xb   :  { %62 = vmatpush.msra.mxu0 %v35_v3 }
   0xc   :  { %106 = vmatmul.msk.f32.vlgmr.msra.gmra.mxu0 %vm43_vm0, %v34_v4  ;;  %94 = vmatpush.msra.mxu1 %v68_v8 }
  0x89   :  { %v64_v10 = vpop.f32.mrf.mxu0 }
  0x8a   :  { %v65_v11 = vadd.f32 %v109_v9, %v64_v10 }
  0x8c   :  { %111 = vtanh.f32 %v65_v11 }
  0x92   :  { %v112_v12 = vpop.eup %111 }
  0x93   :  { %107 = vmatmul.msk.f32.vlgmr.msra.gmra.mxu1 %vm43_vm0, %v112_v12 }
 0x110   :  { %v96_v14 = vpop.f32.mrf.mxu1 }
 0x111   :  { %v97_v15 = vadd.f32 %v110_v13, %v96_v14 }
 0x113   :  { %100 = vst.msk [vmem:[%s213_s5] sm:$0xff] %vm99_vm1, %v97_v15 }
 0x114   :  { %105 = vsyncpa [#allocation3], 1 }

</bundles_post_ra>
